<compile_context>
chip_gen: v6e
topology: v6e:2x2x1
jax: 0.10.0
libtpu: 0.0.40
codegen_flags: <defaults>
</compile_context>

<pallas_src>
import numpy as np
import jax
import jax.numpy as jnp
from jax.experimental import pallas as pl
from jax.experimental.pallas import tpu as pltpu


def lstm_attention_kernel(xemb_ref,           # VMEM (S, D)  gathered token embeddings
                          wih_ref, whh_ref,   # VMEM (D, 4D) packed gate weights (i|f|g|o)
                          b_ref,              # VMEM (1, 4D) combined gate bias
                          h0_ref, c0_ref,     # VMEM (1, D)  initial states
                          wa1_ref, ba1_ref,   # VMEM (D, D), (1, D)   att_fc1
                          wa2_ref, ba2_ref,   # VMEM (1, D), (1, 1)   att_fc2
                          wfc_ref, bfc_ref,   # VMEM (D, 4), (1, 4)   fc1
                          out_ref,            # VMEM (1, 4)  log-softmax output
                          hseq_ref):          # VMEM scratch (S, D)   LSTM outputs
    S, D = hseq_ref.shape

    def sigmoid(z):
        # approx reciprocal -> EUP slot, keeps the divide off the serial VPU chain
        return pl.reciprocal(1.0 + jnp.exp(-z), approx=True)

    # ---- hoisted loads (a handful of vregs, read once) ------------------------
    whh = whh_ref[...]                                    # (D, 4D)
    bias = b_ref[...]                                     # (1, 4D)

    # ---- input-to-hidden path for ALL steps in one lane-dense MXU call --------
    xw = jnp.dot(xemb_ref[...], wih_ref[...],
                 preferred_element_type=jnp.float32) + bias        # (S, 4D)

    # ---- LSTM recurrence (PyTorch gate order i, f, g, o), fully unrolled ------
    h = h0_ref[...]                                       # (1, D)
    c = c0_ref[...]                                       # (1, D)
    for t in range(S):                                    # S is small & static
        gates = xw[t:t + 1, :] + jnp.dot(h, whh,
                                         preferred_element_type=jnp.float32)  # (1, 4D)
        gi = sigmoid(gates[:, 0 * D:1 * D])
        gf = sigmoid(gates[:, 1 * D:2 * D])
        gg = jnp.tanh(gates[:, 2 * D:3 * D])
        go = sigmoid(gates[:, 3 * D:4 * D])
        c = gf * c + gi * gg
        h = go * jnp.tanh(c)
        hseq_ref[t:t + 1, :] = h

    # ---- attention over the sequence ------------------------------------------
    hs = hseq_ref[...]                                              # (S, D)
    a = jnp.tanh(jnp.dot(hs, wa1_ref[...],
                         preferred_element_type=jnp.float32) + ba1_ref[...])   # (S, D)
    logit = jnp.sum(a * wa2_ref[...], axis=1, keepdims=True) + ba2_ref[...]    # (S, 1)
    m = jnp.max(logit, axis=0, keepdims=True)
    e = jnp.exp(logit - m)
    alpha = e * pl.reciprocal(jnp.sum(e, axis=0, keepdims=True), approx=True)  # (S, 1)
    ctx = jnp.sum(alpha * hs, axis=0, keepdims=True)                # (1, D)

    # ---- classifier + log_softmax ----------------------------------------------
    y = jnp.dot(ctx, wfc_ref[...],
                preferred_element_type=jnp.float32) + bfc_ref[...]  # (1, 4)
    ym = jnp.max(y, axis=1, keepdims=True)
    out_ref[...] = y - ym - jnp.log(jnp.sum(jnp.exp(y - ym), axis=1, keepdims=True))


def pack_params(params):
    """One-time parameter packing (done once, outside the per-call path)."""
    V, D = params["embed"].shape
    return {
        "embed": params["embed"],                                   # stays in HBM; gathered per call
        "wih": params["w_ih"].T,                                    # (D, 4D), columns = [i|f|g|o]
        "whh": params["w_hh"].T,                                    # (D, 4D)
        "b": (params["b_ih"] + params["b_hh"]).reshape(1, 4 * D),   # (1, 4D)
        "h0": params["h0"].reshape(1, D),
        "c0": params["c0"].reshape(1, D),
        "wa1": params["att1_w"].T,                                  # (D, D)
        "ba1": params["att1_b"].reshape(1, D),
        "wa2": params["att2_w"].reshape(1, D),
        "ba2": params["att2_b"].reshape(1, 1),
        "wfc": params["fc1_w"].T,                                   # (D, 4)
        "bfc": params["fc1_b"].reshape(1, 4),
    }


@jax.jit
def lstm_attention_net(tokens, packed):
    """Pallas forward pass.  tokens: (S,) int32.  Returns (1, 4) float32 log-probs."""
    D = packed["h0"].shape[1]
    S = tokens.shape[0]

    # Embedding lookup as an XLA gather in the wrapper: only S*D floats ever enter
    # VMEM; the full (V, D) table never goes through a VMEM BlockSpec.
    xemb = packed["embed"][tokens]                                  # (S, D)

    flops = (2 * S * D * 4 * D          # input-to-hidden projection
             + 2 * S * D * 4 * D        # recurrent projection
             + 2 * S * D * D            # attention fc1
             + 2 * S * D                # attention score
             + 2 * S * D                # context
             + 2 * D * 4)               # classifier
    weight_bytes = sum(int(np.prod(v.shape)) * v.dtype.itemsize
                       for k, v in packed.items() if k != "embed")
    cost = pl.CostEstimate(flops=flops,
                           transcendentals=10 * S * D,
                           bytes_accessed=weight_bytes + S * D * 4 + 4 * 4)

    vmem = pl.BlockSpec(memory_space=pltpu.MemorySpace.VMEM)

    # TODO(synk): for throughput on v7x (2 TCs) add a batch grid axis with
    # dimension_semantics=("parallel",); the module itself is batch=1 so it is
    # kept as a single invocation here.
    return pl.pallas_call(
        lstm_attention_kernel,
        out_shape=jax.ShapeDtypeStruct((1, 4), jnp.float32),
        in_specs=[vmem] * 12,
        out_specs=vmem,
        scratch_shapes=[pltpu.VMEM((S, D), jnp.float32)],
        cost_estimate=cost,
    )(xemb, packed["wih"], packed["whh"], packed["b"],
      packed["h0"], packed["c0"],
      packed["wa1"], packed["ba1"], packed["wa2"], packed["ba2"],
      packed["wfc"], packed["bfc"])


def reference(tokens, params):
    """Pure-JAX reference matching the PyTorch forward semantics."""
    D = params["embed"].shape[1]
    emb = params["embed"][tokens]                      # (S, D)
    h = params["h0"].reshape(1, D)
    c = params["c0"].reshape(1, D)
    b = params["b_ih"] + params["b_hh"]
    outs = []
    for t in range(tokens.shape[0]):
        x_t = emb[t:t + 1]
        gates = x_t @ params["w_ih"].T + h @ params["w_hh"].T + b
        i = jax.nn.sigmoid(gates[:, 0:D])
        f = jax.nn.sigmoid(gates[:, D:2 * D])
        g = jnp.tanh(gates[:, 2 * D:3 * D])
        o = jax.nn.sigmoid(gates[:, 3 * D:4 * D])
        c = f * c + i * g
        h = o * jnp.tanh(c)
        outs.append(h)
    hs = jnp.concatenate(outs, axis=0)                 # (S, D)
    a = jnp.tanh(hs @ params["att1_w"].T + params["att1_b"])
    logit = a @ params["att2_w"].T + params["att2_b"]  # (S, 1)
    alpha = jax.nn.softmax(logit.T, axis=1)            # (1, S)
    ctx = alpha @ hs                                   # (1, D)
    y = ctx @ params["fc1_w"].T + params["fc1_b"]      # (1, 4)
    return jax.nn.log_softmax(y, axis=1)


def init_params(key, vocab_size, embed_dim):
    ks = jax.random.split(key, 12)
    D = embed_dim
    scale = 0.1
    return {
        "embed":  scale * jax.random.normal(ks[0], (vocab_size, D), jnp.float32),
        "w_ih":   scale * jax.random.normal(ks[1], (4 * D, D), jnp.float32),
        "w_hh":   scale * jax.random.normal(ks[2], (4 * D, D), jnp.float32),
        "b_ih":   scale * jax.random.normal(ks[3], (4 * D,), jnp.float32),
        "b_hh":   scale * jax.random.normal(ks[4], (4 * D,), jnp.float32),
        "att1_w": scale * jax.random.normal(ks[5], (D, D), jnp.float32),
        "att1_b": scale * jax.random.normal(ks[6], (D,), jnp.float32),
        "att2_w": scale * jax.random.normal(ks[7], (1, D), jnp.float32),
        "att2_b": scale * jax.random.normal(ks[8], (1,), jnp.float32),
        "fc1_w":  scale * jax.random.normal(ks[9], (4, D), jnp.float32),
        "fc1_b":  scale * jax.random.normal(ks[10], (4,), jnp.float32),
        "h0":     jax.random.normal(ks[11], (1, 1, D), jnp.float32),
        "c0":     jax.random.normal(jax.random.fold_in(ks[11], 1), (1, 1, D), jnp.float32),
    }


if __name__ == "__main__":
    VOCAB, EMBED, SEQ = 50, 32, 8
    key = jax.random.PRNGKey(0)
    k_param, k_tok = jax.random.split(key)
    params = init_params(k_param, VOCAB, EMBED)
    tokens = jax.random.randint(k_tok, (SEQ,), 0, VOCAB, dtype=jnp.int32)

    packed = pack_params(params)       # one-time packing / transposition

    out = jax.block_until_ready(lstm_attention_net(tokens, packed))
    ref = jax.block_until_ready(reference(tokens, params))

    # Tolerance relaxed slightly vs. exact f32: the kernel uses the EUP approximate
    # reciprocal (pl.reciprocal(approx=True)) in the sigmoids and softmax normalizer.
    np.testing.assert_allclose(np.asarray(out), np.asarray(ref), rtol=2e-3, atol=2e-3)
    assert out.shape == (1, 4)
    print("KERNEL_OK")
</pallas_src>

<mosaic_0001>
module attributes {stable_mosaic.version = 11 : i64} {
  func.func @lstm_attention_kernel(%arg0: memref<8x32xf32, #tpu.memory_space<vmem>>, %arg1: memref<32x128xf32, #tpu.memory_space<vmem>>, %arg2: memref<32x128xf32, #tpu.memory_space<vmem>>, %arg3: memref<1x128xf32, #tpu.memory_space<vmem>>, %arg4: memref<1x32xf32, #tpu.memory_space<vmem>>, %arg5: memref<1x32xf32, #tpu.memory_space<vmem>>, %arg6: memref<32x32xf32, #tpu.memory_space<vmem>>, %arg7: memref<1x32xf32, #tpu.memory_space<vmem>>, %arg8: memref<1x32xf32, #tpu.memory_space<vmem>>, %arg9: memref<1x1xf32, #tpu.memory_space<vmem>>, %arg10: memref<32x4xf32, #tpu.memory_space<vmem>>, %arg11: memref<1x4xf32, #tpu.memory_space<vmem>>, %arg12: memref<1x4xf32, #tpu.memory_space<vmem>>, %arg13: memref<8x32xf32, #tpu.memory_space<vmem>>) attributes {dimension_semantics = [], scalar_prefetch = 0 : i64, scratch_operands = 1 : i64, tpu.core_type = #tpu.core_type<tc>} {
    %c0 = arith.constant 0 : index
    %c0_0 = arith.constant 0 : index
    %0 = vector.load %arg2[%c0, %c0_0] : memref<32x128xf32, #tpu.memory_space<vmem>>, vector<32x128xf32>
    %c0_1 = arith.constant 0 : index
    %c0_2 = arith.constant 0 : index
    %1 = vector.load %arg3[%c0_1, %c0_2] : memref<1x128xf32, #tpu.memory_space<vmem>>, vector<1x128xf32>
    %c0_3 = arith.constant 0 : index
    %c0_4 = arith.constant 0 : index
    %2 = vector.load %arg0[%c0_3, %c0_4] : memref<8x32xf32, #tpu.memory_space<vmem>>, vector<8x32xf32>
    %c0_5 = arith.constant 0 : index
    %c0_6 = arith.constant 0 : index
    %3 = vector.load %arg1[%c0_5, %c0_6] : memref<32x128xf32, #tpu.memory_space<vmem>>, vector<32x128xf32>
    %cst = arith.constant dense<0.000000e+00> : vector<8x128xf32>
    %4 = tpu.matmul %2, %3, %cst {dimension_numbers = #tpu.dot_dimension_numbers<[1], [0], [0], [1], [0, 0, 1, 1], [], []>} : vector<8x32xf32>, vector<32x128xf32>, vector<8x128xf32> -> vector<8x128xf32>
    %5 = vector.broadcast %1 : vector<1x128xf32> to vector<8x128xf32>
    %6 = arith.addf %4, %5 : vector<8x128xf32>
    %c0_7 = arith.constant 0 : index
    %c0_8 = arith.constant 0 : index
    %7 = vector.load %arg4[%c0_7, %c0_8] : memref<1x32xf32, #tpu.memory_space<vmem>>, vector<1x32xf32>
    %c0_9 = arith.constant 0 : index
    %c0_10 = arith.constant 0 : index
    %8 = vector.load %arg5[%c0_9, %c0_10] : memref<1x32xf32, #tpu.memory_space<vmem>>, vector<1x32xf32>
    %9 = vector.extract_strided_slice %6 {offsets = [0, 0], sizes = [1, 128], strides = [1, 1]} : vector<8x128xf32> to vector<1x128xf32>
    %cst_11 = arith.constant dense<0.000000e+00> : vector<1x128xf32>
    %10 = tpu.matmul %7, %0, %cst_11 {dimension_numbers = #tpu.dot_dimension_numbers<[1], [0], [0], [1], [0, 0, 1, 1], [], []>} : vector<1x32xf32>, vector<32x128xf32>, vector<1x128xf32> -> vector<1x128xf32>
    %11 = arith.addf %9, %10 : vector<1x128xf32>
    %12 = vector.extract_strided_slice %11 {offsets = [0, 0], sizes = [1, 32], strides = [1, 1]} : vector<1x128xf32> to vector<1x32xf32>
    %cst_12 = arith.constant 0.000000e+00 : f32
    %13 = vector.broadcast %cst_12 : f32 to vector<1x32xf32>
    %14 = arith.subf %13, %12 : vector<1x32xf32>
    %15 = math.exp %14 : vector<1x32xf32>
    %cst_13 = arith.constant 1.000000e+00 : f32
    %16 = vector.broadcast %cst_13 : f32 to vector<1x32xf32>
    %17 = arith.addf %16, %15 : vector<1x32xf32>
    %18 = tpu.reciprocal %17 {approx = true} : vector<1x32xf32> -> vector<1x32xf32>
    %19 = vector.extract_strided_slice %11 {offsets = [0, 32], sizes = [1, 32], strides = [1, 1]} : vector<1x128xf32> to vector<1x32xf32>
    %cst_14 = arith.constant 0.000000e+00 : f32
    %20 = vector.broadcast %cst_14 : f32 to vector<1x32xf32>
    %21 = arith.subf %20, %19 : vector<1x32xf32>
    %22 = math.exp %21 : vector<1x32xf32>
    %cst_15 = arith.constant 1.000000e+00 : f32
    %23 = vector.broadcast %cst_15 : f32 to vector<1x32xf32>
    %24 = arith.addf %23, %22 : vector<1x32xf32>
    %25 = tpu.reciprocal %24 {approx = true} : vector<1x32xf32> -> vector<1x32xf32>
    %26 = vector.extract_strided_slice %11 {offsets = [0, 64], sizes = [1, 32], strides = [1, 1]} : vector<1x128xf32> to vector<1x32xf32>
    %27 = math.tanh %26 : vector<1x32xf32>
    %28 = vector.extract_strided_slice %11 {offsets = [0, 96], sizes = [1, 32], strides = [1, 1]} : vector<1x128xf32> to vector<1x32xf32>
    %cst_16 = arith.constant 0.000000e+00 : f32
    %29 = vector.broadcast %cst_16 : f32 to vector<1x32xf32>
    %30 = arith.subf %29, %28 : vector<1x32xf32>
    %31 = math.exp %30 : vector<1x32xf32>
    %cst_17 = arith.constant 1.000000e+00 : f32
    %32 = vector.broadcast %cst_17 : f32 to vector<1x32xf32>
    %33 = arith.addf %32, %31 : vector<1x32xf32>
    %34 = tpu.reciprocal %33 {approx = true} : vector<1x32xf32> -> vector<1x32xf32>
    %35 = arith.mulf %25, %8 : vector<1x32xf32>
    %36 = arith.mulf %18, %27 : vector<1x32xf32>
    %37 = arith.addf %35, %36 : vector<1x32xf32>
    %38 = math.tanh %37 : vector<1x32xf32>
    %39 = arith.mulf %34, %38 : vector<1x32xf32>
    %c0_18 = arith.constant 0 : index
    %c0_19 = arith.constant 0 : index
    %40 = vector.load %arg13[%c0_18, %c0_19] : memref<8x32xf32, #tpu.memory_space<vmem>>, vector<1x32xf32>
    tpu.vector_store %arg13[%c0_18, %c0_19], %39 {strides = array<i32>} : memref<8x32xf32, #tpu.memory_space<vmem>>, vector<1x32xf32>,
    %41 = vector.extract_strided_slice %6 {offsets = [1, 0], sizes = [1, 128], strides = [1, 1]} : vector<8x128xf32> to vector<1x128xf32>
    %cst_20 = arith.constant dense<0.000000e+00> : vector<1x128xf32>
    %42 = tpu.matmul %39, %0, %cst_20 {dimension_numbers = #tpu.dot_dimension_numbers<[1], [0], [0], [1], [0, 0, 1, 1], [], []>} : vector<1x32xf32>, vector<32x128xf32>, vector<1x128xf32> -> vector<1x128xf32>
    %43 = arith.addf %41, %42 : vector<1x128xf32>
    %44 = vector.extract_strided_slice %43 {offsets = [0, 0], sizes = [1, 32], strides = [1, 1]} : vector<1x128xf32> to vector<1x32xf32>
    %cst_21 = arith.constant 0.000000e+00 : f32
    %45 = vector.broadcast %cst_21 : f32 to vector<1x32xf32>
    %46 = arith.subf %45, %44 : vector<1x32xf32>
    %47 = math.exp %46 : vector<1x32xf32>
    %cst_22 = arith.constant 1.000000e+00 : f32
    %48 = vector.broadcast %cst_22 : f32 to vector<1x32xf32>
    %49 = arith.addf %48, %47 : vector<1x32xf32>
    %50 = tpu.reciprocal %49 {approx = true} : vector<1x32xf32> -> vector<1x32xf32>
    %51 = vector.extract_strided_slice %43 {offsets = [0, 32], sizes = [1, 32], strides = [1, 1]} : vector<1x128xf32> to vector<1x32xf32>
    %cst_23 = arith.constant 0.000000e+00 : f32
    %52 = vector.broadcast %cst_23 : f32 to vector<1x32xf32>
    %53 = arith.subf %52, %51 : vector<1x32xf32>
    %54 = math.exp %53 : vector<1x32xf32>
    %cst_24 = arith.constant 1.000000e+00 : f32
    %55 = vector.broadcast %cst_24 : f32 to vector<1x32xf32>
    %56 = arith.addf %55, %54 : vector<1x32xf32>
    %57 = tpu.reciprocal %56 {approx = true} : vector<1x32xf32> -> vector<1x32xf32>
    %58 = vector.extract_strided_slice %43 {offsets = [0, 64], sizes = [1, 32], strides = [1, 1]} : vector<1x128xf32> to vector<1x32xf32>
    %59 = math.tanh %58 : vector<1x32xf32>
    %60 = vector.extract_strided_slice %43 {offsets = [0, 96], sizes = [1, 32], strides = [1, 1]} : vector<1x128xf32> to vector<1x32xf32>
    %cst_25 = arith.constant 0.000000e+00 : f32
    %61 = vector.broadcast %cst_25 : f32 to vector<1x32xf32>
    %62 = arith.subf %61, %60 : vector<1x32xf32>
    %63 = math.exp %62 : vector<1x32xf32>
    %cst_26 = arith.constant 1.000000e+00 : f32
    %64 = vector.broadcast %cst_26 : f32 to vector<1x32xf32>
    %65 = arith.addf %64, %63 : vector<1x32xf32>
    %66 = tpu.reciprocal %65 {approx = true} : vector<1x32xf32> -> vector<1x32xf32>
    %67 = arith.mulf %57, %37 : vector<1x32xf32>
    %68 = arith.mulf %50, %59 : vector<1x32xf32>
    %69 = arith.addf %67, %68 : vector<1x32xf32>
    %70 = math.tanh %69 : vector<1x32xf32>
    %71 = arith.mulf %66, %70 : vector<1x32xf32>
    %c1 = arith.constant 1 : index
    %c0_27 = arith.constant 0 : index
    %72 = vector.load %arg13[%c1, %c0_27] : memref<8x32xf32, #tpu.memory_space<vmem>>, vector<1x32xf32>
    tpu.vector_store %arg13[%c1, %c0_27], %71 {strides = array<i32>} : memref<8x32xf32, #tpu.memory_space<vmem>>, vector<1x32xf32>,
    %73 = vector.extract_strided_slice %6 {offsets = [2, 0], sizes = [1, 128], strides = [1, 1]} : vector<8x128xf32> to vector<1x128xf32>
    %cst_28 = arith.constant dense<0.000000e+00> : vector<1x128xf32>
    %74 = tpu.matmul %71, %0, %cst_28 {dimension_numbers = #tpu.dot_dimension_numbers<[1], [0], [0], [1], [0, 0, 1, 1], [], []>} : vector<1x32xf32>, vector<32x128xf32>, vector<1x128xf32> -> vector<1x128xf32>
    %75 = arith.addf %73, %74 : vector<1x128xf32>
    %76 = vector.extract_strided_slice %75 {offsets = [0, 0], sizes = [1, 32], strides = [1, 1]} : vector<1x128xf32> to vector<1x32xf32>
    %cst_29 = arith.constant 0.000000e+00 : f32
    %77 = vector.broadcast %cst_29 : f32 to vector<1x32xf32>
    %78 = arith.subf %77, %76 : vector<1x32xf32>
    %79 = math.exp %78 : vector<1x32xf32>
    %cst_30 = arith.constant 1.000000e+00 : f32
    %80 = vector.broadcast %cst_30 : f32 to vector<1x32xf32>
    %81 = arith.addf %80, %79 : vector<1x32xf32>
    %82 = tpu.reciprocal %81 {approx = true} : vector<1x32xf32> -> vector<1x32xf32>
    %83 = vector.extract_strided_slice %75 {offsets = [0, 32], sizes = [1, 32], strides = [1, 1]} : vector<1x128xf32> to vector<1x32xf32>
    %cst_31 = arith.constant 0.000000e+00 : f32
    %84 = vector.broadcast %cst_31 : f32 to vector<1x32xf32>
    %85 = arith.subf %84, %83 : vector<1x32xf32>
    %86 = math.exp %85 : vector<1x32xf32>
    %cst_32 = arith.constant 1.000000e+00 : f32
    %87 = vector.broadcast %cst_32 : f32 to vector<1x32xf32>
    %88 = arith.addf %87, %86 : vector<1x32xf32>
    %89 = tpu.reciprocal %88 {approx = true} : vector<1x32xf32> -> vector<1x32xf32>
    %90 = vector.extract_strided_slice %75 {offsets = [0, 64], sizes = [1, 32], strides = [1, 1]} : vector<1x128xf32> to vector<1x32xf32>
    %91 = math.tanh %90 : vector<1x32xf32>
    %92 = vector.extract_strided_slice %75 {offsets = [0, 96], sizes = [1, 32], strides = [1, 1]} : vector<1x128xf32> to vector<1x32xf32>
    %cst_33 = arith.constant 0.000000e+00 : f32
    %93 = vector.broadcast %cst_33 : f32 to vector<1x32xf32>
    %94 = arith.subf %93, %92 : vector<1x32xf32>
    %95 = math.exp %94 : vector<1x32xf32>
    %cst_34 = arith.constant 1.000000e+00 : f32
    %96 = vector.broadcast %cst_34 : f32 to vector<1x32xf32>
    %97 = arith.addf %96, %95 : vector<1x32xf32>
    %98 = tpu.reciprocal %97 {approx = true} : vector<1x32xf32> -> vector<1x32xf32>
    %99 = arith.mulf %89, %69 : vector<1x32xf32>
    %100 = arith.mulf %82, %91 : vector<1x32xf32>
    %101 = arith.addf %99, %100 : vector<1x32xf32>
    %102 = math.tanh %101 : vector<1x32xf32>
    %103 = arith.mulf %98, %102 : vector<1x32xf32>
    %c2 = arith.constant 2 : index
    %c0_35 = arith.constant 0 : index
    %104 = vector.load %arg13[%c2, %c0_35] : memref<8x32xf32, #tpu.memory_space<vmem>>, vector<1x32xf32>
    tpu.vector_store %arg13[%c2, %c0_35], %103 {strides = array<i32>} : memref<8x32xf32, #tpu.memory_space<vmem>>, vector<1x32xf32>,
    %105 = vector.extract_strided_slice %6 {offsets = [3, 0], sizes = [1, 128], strides = [1, 1]} : vector<8x128xf32> to vector<1x128xf32>
    %cst_36 = arith.constant dense<0.000000e+00> : vector<1x128xf32>
    %106 = tpu.matmul %103, %0, %cst_36 {dimension_numbers = #tpu.dot_dimension_numbers<[1], [0], [0], [1], [0, 0, 1, 1], [], []>} : vector<1x32xf32>, vector<32x128xf32>, vector<1x128xf32> -> vector<1x128xf32>
    %107 = arith.addf %105, %106 : vector<1x128xf32>
    %108 = vector.extract_strided_slice %107 {offsets = [0, 0], sizes = [1, 32], strides = [1, 1]} : vector<1x128xf32> to vector<1x32xf32>
    %cst_37 = arith.constant 0.000000e+00 : f32
    %109 = vector.broadcast %cst_37 : f32 to vector<1x32xf32>
    %110 = arith.subf %109, %108 : vector<1x32xf32>
    %111 = math.exp %110 : vector<1x32xf32>
    %cst_38 = arith.constant 1.000000e+00 : f32
    %112 = vector.broadcast %cst_38 : f32 to vector<1x32xf32>
    %113 = arith.addf %112, %111 : vector<1x32xf32>
    %114 = tpu.reciprocal %113 {approx = true} : vector<1x32xf32> -> vector<1x32xf32>
    %115 = vector.extract_strided_slice %107 {offsets = [0, 32], sizes = [1, 32], strides = [1, 1]} : vector<1x128xf32> to vector<1x32xf32>
    %cst_39 = arith.constant 0.000000e+00 : f32
    %116 = vector.broadcast %cst_39 : f32 to vector<1x32xf32>
    %117 = arith.subf %116, %115 : vector<1x32xf32>
    %118 = math.exp %117 : vector<1x32xf32>
    %cst_40 = arith.constant 1.000000e+00 : f32
    %119 = vector.broadcast %cst_40 : f32 to vector<1x32xf32>
    %120 = arith.addf %119, %118 : vector<1x32xf32>
    %121 = tpu.reciprocal %120 {approx = true} : vector<1x32xf32> -> vector<1x32xf32>
    %122 = vector.extract_strided_slice %107 {offsets = [0, 64], sizes = [1, 32], strides = [1, 1]} : vector<1x128xf32> to vector<1x32xf32>
    %123 = math.tanh %122 : vector<1x32xf32>
    %124 = vector.extract_strided_slice %107 {offsets = [0, 96], sizes = [1, 32], strides = [1, 1]} : vector<1x128xf32> to vector<1x32xf32>
    %cst_41 = arith.constant 0.000000e+00 : f32
    %125 = vector.broadcast %cst_41 : f32 to vector<1x32xf32>
    %126 = arith.subf %125, %124 : vector<1x32xf32>
    %127 = math.exp %126 : vector<1x32xf32>
    %cst_42 = arith.constant 1.000000e+00 : f32
    %128 = vector.broadcast %cst_42 : f32 to vector<1x32xf32>
    %129 = arith.addf %128, %127 : vector<1x32xf32>
    %130 = tpu.reciprocal %129 {approx = true} : vector<1x32xf32> -> vector<1x32xf32>
    %131 = arith.mulf %121, %101 : vector<1x32xf32>
    %132 = arith.mulf %114, %123 : vector<1x32xf32>
    %133 = arith.addf %131, %132 : vector<1x32xf32>
    %134 = math.tanh %133 : vector<1x32xf32>
    %135 = arith.mulf %130, %134 : vector<1x32xf32>
    %c3 = arith.constant 3 : index
    %c0_43 = arith.constant 0 : index
    %136 = vector.load %arg13[%c3, %c0_43] : memref<8x32xf32, #tpu.memory_space<vmem>>, vector<1x32xf32>
    tpu.vector_store %arg13[%c3, %c0_43], %135 {strides = array<i32>} : memref<8x32xf32, #tpu.memory_space<vmem>>, vector<1x32xf32>,
    %137 = vector.extract_strided_slice %6 {offsets = [4, 0], sizes = [1, 128], strides = [1, 1]} : vector<8x128xf32> to vector<1x128xf32>
    %cst_44 = arith.constant dense<0.000000e+00> : vector<1x128xf32>
    %138 = tpu.matmul %135, %0, %cst_44 {dimension_numbers = #tpu.dot_dimension_numbers<[1], [0], [0], [1], [0, 0, 1, 1], [], []>} : vector<1x32xf32>, vector<32x128xf32>, vector<1x128xf32> -> vector<1x128xf32>
    %139 = arith.addf %137, %138 : vector<1x128xf32>
    %140 = vector.extract_strided_slice %139 {offsets = [0, 0], sizes = [1, 32], strides = [1, 1]} : vector<1x128xf32> to vector<1x32xf32>
    %cst_45 = arith.constant 0.000000e+00 : f32
    %141 = vector.broadcast %cst_45 : f32 to vector<1x32xf32>
    %142 = arith.subf %141, %140 : vector<1x32xf32>
    %143 = math.exp %142 : vector<1x32xf32>
    %cst_46 = arith.constant 1.000000e+00 : f32
    %144 = vector.broadcast %cst_46 : f32 to vector<1x32xf32>
    %145 = arith.addf %144, %143 : vector<1x32xf32>
    %146 = tpu.reciprocal %145 {approx = true} : vector<1x32xf32> -> vector<1x32xf32>
    %147 = vector.extract_strided_slice %139 {offsets = [0, 32], sizes = [1, 32], strides = [1, 1]} : vector<1x128xf32> to vector<1x32xf32>
    %cst_47 = arith.constant 0.000000e+00 : f32
    %148 = vector.broadcast %cst_47 : f32 to vector<1x32xf32>
    %149 = arith.subf %148, %147 : vector<1x32xf32>
    %150 = math.exp %149 : vector<1x32xf32>
    %cst_48 = arith.constant 1.000000e+00 : f32
    %151 = vector.broadcast %cst_48 : f32 to vector<1x32xf32>
    %152 = arith.addf %151, %150 : vector<1x32xf32>
    %153 = tpu.reciprocal %152 {approx = true} : vector<1x32xf32> -> vector<1x32xf32>
    %154 = vector.extract_strided_slice %139 {offsets = [0, 64], sizes = [1, 32], strides = [1, 1]} : vector<1x128xf32> to vector<1x32xf32>
    %155 = math.tanh %154 : vector<1x32xf32>
    %156 = vector.extract_strided_slice %139 {offsets = [0, 96], sizes = [1, 32], strides = [1, 1]} : vector<1x128xf32> to vector<1x32xf32>
    %cst_49 = arith.constant 0.000000e+00 : f32
    %157 = vector.broadcast %cst_49 : f32 to vector<1x32xf32>
    %158 = arith.subf %157, %156 : vector<1x32xf32>
    %159 = math.exp %158 : vector<1x32xf32>
    %cst_50 = arith.constant 1.000000e+00 : f32
    %160 = vector.broadcast %cst_50 : f32 to vector<1x32xf32>
    %161 = arith.addf %160, %159 : vector<1x32xf32>
    %162 = tpu.reciprocal %161 {approx = true} : vector<1x32xf32> -> vector<1x32xf32>
    %163 = arith.mulf %153, %133 : vector<1x32xf32>
    %164 = arith.mulf %146, %155 : vector<1x32xf32>
    %165 = arith.addf %163, %164 : vector<1x32xf32>
    %166 = math.tanh %165 : vector<1x32xf32>
    %167 = arith.mulf %162, %166 : vector<1x32xf32>
    %c4 = arith.constant 4 : index
    %c0_51 = arith.constant 0 : index
    %168 = vector.load %arg13[%c4, %c0_51] : memref<8x32xf32, #tpu.memory_space<vmem>>, vector<1x32xf32>
    tpu.vector_store %arg13[%c4, %c0_51], %167 {strides = array<i32>} : memref<8x32xf32, #tpu.memory_space<vmem>>, vector<1x32xf32>,
    %169 = vector.extract_strided_slice %6 {offsets = [5, 0], sizes = [1, 128], strides = [1, 1]} : vector<8x128xf32> to vector<1x128xf32>
    %cst_52 = arith.constant dense<0.000000e+00> : vector<1x128xf32>
    %170 = tpu.matmul %167, %0, %cst_52 {dimension_numbers = #tpu.dot_dimension_numbers<[1], [0], [0], [1], [0, 0, 1, 1], [], []>} : vector<1x32xf32>, vector<32x128xf32>, vector<1x128xf32> -> vector<1x128xf32>
    %171 = arith.addf %169, %170 : vector<1x128xf32>
    %172 = vector.extract_strided_slice %171 {offsets = [0, 0], sizes = [1, 32], strides = [1, 1]} : vector<1x128xf32> to vector<1x32xf32>
    %cst_53 = arith.constant 0.000000e+00 : f32
    %173 = vector.broadcast %cst_53 : f32 to vector<1x32xf32>
    %174 = arith.subf %173, %172 : vector<1x32xf32>
    %175 = math.exp %174 : vector<1x32xf32>
    %cst_54 = arith.constant 1.000000e+00 : f32
    %176 = vector.broadcast %cst_54 : f32 to vector<1x32xf32>
    %177 = arith.addf %176, %175 : vector<1x32xf32>
    %178 = tpu.reciprocal %177 {approx = true} : vector<1x32xf32> -> vector<1x32xf32>
    %179 = vector.extract_strided_slice %171 {offsets = [0, 32], sizes = [1, 32], strides = [1, 1]} : vector<1x128xf32> to vector<1x32xf32>
    %cst_55 = arith.constant 0.000000e+00 : f32
    %180 = vector.broadcast %cst_55 : f32 to vector<1x32xf32>
    %181 = arith.subf %180, %179 : vector<1x32xf32>
    %182 = math.exp %181 : vector<1x32xf32>
    %cst_56 = arith.constant 1.000000e+00 : f32
    %183 = vector.broadcast %cst_56 : f32 to vector<1x32xf32>
    %184 = arith.addf %183, %182 : vector<1x32xf32>
    %185 = tpu.reciprocal %184 {approx = true} : vector<1x32xf32> -> vector<1x32xf32>
    %186 = vector.extract_strided_slice %171 {offsets = [0, 64], sizes = [1, 32], strides = [1, 1]} : vector<1x128xf32> to vector<1x32xf32>
    %187 = math.tanh %186 : vector<1x32xf32>
    %188 = vector.extract_strided_slice %171 {offsets = [0, 96], sizes = [1, 32], strides = [1, 1]} : vector<1x128xf32> to vector<1x32xf32>
    %cst_57 = arith.constant 0.000000e+00 : f32
    %189 = vector.broadcast %cst_57 : f32 to vector<1x32xf32>
    %190 = arith.subf %189, %188 : vector<1x32xf32>
    %191 = math.exp %190 : vector<1x32xf32>
    %cst_58 = arith.constant 1.000000e+00 : f32
    %192 = vector.broadcast %cst_58 : f32 to vector<1x32xf32>
    %193 = arith.addf %192, %191 : vector<1x32xf32>
    %194 = tpu.reciprocal %193 {approx = true} : vector<1x32xf32> -> vector<1x32xf32>
    %195 = arith.mulf %185, %165 : vector<1x32xf32>
    %196 = arith.mulf %178, %187 : vector<1x32xf32>
    %197 = arith.addf %195, %196 : vector<1x32xf32>
    %198 = math.tanh %197 : vector<1x32xf32>
    %199 = arith.mulf %194, %198 : vector<1x32xf32>
    %c5 = arith.constant 5 : index
    %c0_59 = arith.constant 0 : index
    %200 = vector.load %arg13[%c5, %c0_59] : memref<8x32xf32, #tpu.memory_space<vmem>>, vector<1x32xf32>
    tpu.vector_store %arg13[%c5, %c0_59], %199 {strides = array<i32>} : memref<8x32xf32, #tpu.memory_space<vmem>>, vector<1x32xf32>,
    %201 = vector.extract_strided_slice %6 {offsets = [6, 0], sizes = [1, 128], strides = [1, 1]} : vector<8x128xf32> to vector<1x128xf32>
    %cst_60 = arith.constant dense<0.000000e+00> : vector<1x128xf32>
    %202 = tpu.matmul %199, %0, %cst_60 {dimension_numbers = #tpu.dot_dimension_numbers<[1], [0], [0], [1], [0, 0, 1, 1], [], []>} : vector<1x32xf32>, vector<32x128xf32>, vector<1x128xf32> -> vector<1x128xf32>
    %203 = arith.addf %201, %202 : vector<1x128xf32>
    %204 = vector.extract_strided_slice %203 {offsets = [0, 0], sizes = [1, 32], strides = [1, 1]} : vector<1x128xf32> to vector<1x32xf32>
    %cst_61 = arith.constant 0.000000e+00 : f32
    %205 = vector.broadcast %cst_61 : f32 to vector<1x32xf32>
    %206 = arith.subf %205, %204 : vector<1x32xf32>
    %207 = math.exp %206 : vector<1x32xf32>
    %cst_62 = arith.constant 1.000000e+00 : f32
    %208 = vector.broadcast %cst_62 : f32 to vector<1x32xf32>
    %209 = arith.addf %208, %207 : vector<1x32xf32>
    %210 = tpu.reciprocal %209 {approx = true} : vector<1x32xf32> -> vector<1x32xf32>
    %211 = vector.extract_strided_slice %203 {offsets = [0, 32], sizes = [1, 32], strides = [1, 1]} : vector<1x128xf32> to vector<1x32xf32>
    %cst_63 = arith.constant 0.000000e+00 : f32
    %212 = vector.broadcast %cst_63 : f32 to vector<1x32xf32>
    %213 = arith.subf %212, %211 : vector<1x32xf32>
    %214 = math.exp %213 : vector<1x32xf32>
    %cst_64 = arith.constant 1.000000e+00 : f32
    %215 = vector.broadcast %cst_64 : f32 to vector<1x32xf32>
    %216 = arith.addf %215, %214 : vector<1x32xf32>
    %217 = tpu.reciprocal %216 {approx = true} : vector<1x32xf32> -> vector<1x32xf32>
    %218 = vector.extract_strided_slice %203 {offsets = [0, 64], sizes = [1, 32], strides = [1, 1]} : vector<1x128xf32> to vector<1x32xf32>
    %219 = math.tanh %218 : vector<1x32xf32>
    %220 = vector.extract_strided_slice %203 {offsets = [0, 96], sizes = [1, 32], strides = [1, 1]} : vector<1x128xf32> to vector<1x32xf32>
    %cst_65 = arith.constant 0.000000e+00 : f32
    %221 = vector.broadcast %cst_65 : f32 to vector<1x32xf32>
    %222 = arith.subf %221, %220 : vector<1x32xf32>
    %223 = math.exp %222 : vector<1x32xf32>
    %cst_66 = arith.constant 1.000000e+00 : f32
    %224 = vector.broadcast %cst_66 : f32 to vector<1x32xf32>
    %225 = arith.addf %224, %223 : vector<1x32xf32>
    %226 = tpu.reciprocal %225 {approx = true} : vector<1x32xf32> -> vector<1x32xf32>
    %227 = arith.mulf %217, %197 : vector<1x32xf32>
    %228 = arith.mulf %210, %219 : vector<1x32xf32>
    %229 = arith.addf %227, %228 : vector<1x32xf32>
    %230 = math.tanh %229 : vector<1x32xf32>
    %231 = arith.mulf %226, %230 : vector<1x32xf32>
    %c6 = arith.constant 6 : index
    %c0_67 = arith.constant 0 : index
    %232 = vector.load %arg13[%c6, %c0_67] : memref<8x32xf32, #tpu.memory_space<vmem>>, vector<1x32xf32>
    tpu.vector_store %arg13[%c6, %c0_67], %231 {strides = array<i32>} : memref<8x32xf32, #tpu.memory_space<vmem>>, vector<1x32xf32>,
    %233 = vector.extract_strided_slice %6 {offsets = [7, 0], sizes = [1, 128], strides = [1, 1]} : vector<8x128xf32> to vector<1x128xf32>
    %cst_68 = arith.constant dense<0.000000e+00> : vector<1x128xf32>
    %234 = tpu.matmul %231, %0, %cst_68 {dimension_numbers = #tpu.dot_dimension_numbers<[1], [0], [0], [1], [0, 0, 1, 1], [], []>} : vector<1x32xf32>, vector<32x128xf32>, vector<1x128xf32> -> vector<1x128xf32>
    %235 = arith.addf %233, %234 : vector<1x128xf32>
    %236 = vector.extract_strided_slice %235 {offsets = [0, 0], sizes = [1, 32], strides = [1, 1]} : vector<1x128xf32> to vector<1x32xf32>
    %cst_69 = arith.constant 0.000000e+00 : f32
    %237 = vector.broadcast %cst_69 : f32 to vector<1x32xf32>
    %238 = arith.subf %237, %236 : vector<1x32xf32>
    %239 = math.exp %238 : vector<1x32xf32>
    %cst_70 = arith.constant 1.000000e+00 : f32
    %240 = vector.broadcast %cst_70 : f32 to vector<1x32xf32>
    %241 = arith.addf %240, %239 : vector<1x32xf32>
    %242 = tpu.reciprocal %241 {approx = true} : vector<1x32xf32> -> vector<1x32xf32>
    %243 = vector.extract_strided_slice %235 {offsets = [0, 32], sizes = [1, 32], strides = [1, 1]} : vector<1x128xf32> to vector<1x32xf32>
    %cst_71 = arith.constant 0.000000e+00 : f32
    %244 = vector.broadcast %cst_71 : f32 to vector<1x32xf32>
    %245 = arith.subf %244, %243 : vector<1x32xf32>
    %246 = math.exp %245 : vector<1x32xf32>
    %cst_72 = arith.constant 1.000000e+00 : f32
    %247 = vector.broadcast %cst_72 : f32 to vector<1x32xf32>
    %248 = arith.addf %247, %246 : vector<1x32xf32>
    %249 = tpu.reciprocal %248 {approx = true} : vector<1x32xf32> -> vector<1x32xf32>
    %250 = vector.extract_strided_slice %235 {offsets = [0, 64], sizes = [1, 32], strides = [1, 1]} : vector<1x128xf32> to vector<1x32xf32>
    %251 = math.tanh %250 : vector<1x32xf32>
    %252 = vector.extract_strided_slice %235 {offsets = [0, 96], sizes = [1, 32], strides = [1, 1]} : vector<1x128xf32> to vector<1x32xf32>
    %cst_73 = arith.constant 0.000000e+00 : f32
    %253 = vector.broadcast %cst_73 : f32 to vector<1x32xf32>
    %254 = arith.subf %253, %252 : vector<1x32xf32>
    %255 = math.exp %254 : vector<1x32xf32>
    %cst_74 = arith.constant 1.000000e+00 : f32
    %256 = vector.broadcast %cst_74 : f32 to vector<1x32xf32>
    %257 = arith.addf %256, %255 : vector<1x32xf32>
    %258 = tpu.reciprocal %257 {approx = true} : vector<1x32xf32> -> vector<1x32xf32>
    %259 = arith.mulf %249, %229 : vector<1x32xf32>
    %260 = arith.mulf %242, %251 : vector<1x32xf32>
    %261 = arith.addf %259, %260 : vector<1x32xf32>
    %262 = math.tanh %261 : vector<1x32xf32>
    %263 = arith.mulf %258, %262 : vector<1x32xf32>
    %c7 = arith.constant 7 : index
    %c0_75 = arith.constant 0 : index
    %264 = vector.load %arg13[%c7, %c0_75] : memref<8x32xf32, #tpu.memory_space<vmem>>, vector<1x32xf32>
    tpu.vector_store %arg13[%c7, %c0_75], %263 {strides = array<i32>} : memref<8x32xf32, #tpu.memory_space<vmem>>, vector<1x32xf32>,
    %c0_76 = arith.constant 0 : index
    %c0_77 = arith.constant 0 : index
    %265 = vector.load %arg13[%c0_76, %c0_77] : memref<8x32xf32, #tpu.memory_space<vmem>>, vector<8x32xf32>
    %c0_78 = arith.constant 0 : index
    %c0_79 = arith.constant 0 : index
    %266 = vector.load %arg6[%c0_78, %c0_79] : memref<32x32xf32, #tpu.memory_space<vmem>>, vector<32x32xf32>
    %cst_80 = arith.constant dense<0.000000e+00> : vector<8x32xf32>
    %267 = tpu.matmul %265, %266, %cst_80 {dimension_numbers = #tpu.dot_dimension_numbers<[1], [0], [0], [1], [0, 0, 1, 1], [], []>} : vector<8x32xf32>, vector<32x32xf32>, vector<8x32xf32> -> vector<8x32xf32>
    %c0_81 = arith.constant 0 : index
    %c0_82 = arith.constant 0 : index
    %268 = vector.load %arg7[%c0_81, %c0_82] : memref<1x32xf32, #tpu.memory_space<vmem>>, vector<1x32xf32>
    %269 = vector.broadcast %268 : vector<1x32xf32> to vector<8x32xf32>
    %270 = arith.addf %267, %269 : vector<8x32xf32>
    %271 = math.tanh %270 : vector<8x32xf32>
    %c0_83 = arith.constant 0 : index
    %c0_84 = arith.constant 0 : index
    %272 = vector.load %arg8[%c0_83, %c0_84] : memref<1x32xf32, #tpu.memory_space<vmem>>, vector<1x32xf32>
    %273 = vector.broadcast %272 : vector<1x32xf32> to vector<8x32xf32>
    %274 = arith.mulf %271, %273 : vector<8x32xf32>
    %cst_85 = arith.constant dense<0.000000e+00> : vector<8xf32>
    %275 = vector.multi_reduction <add>, %274, %cst_85 [1] : vector<8x32xf32> to vector<8xf32>
    %276 = vector.shape_cast %275 : vector<8xf32> to vector<8x1xf32>
    %c0_86 = arith.constant 0 : index
    %c0_87 = arith.constant 0 : index
    %277 = vector.load %arg9[%c0_86, %c0_87] : memref<1x1xf32, #tpu.memory_space<vmem>>, vector<1x1xf32>
    %278 = vector.broadcast %277 : vector<1x1xf32> to vector<8x1xf32>
    %279 = arith.addf %276, %278 : vector<8x1xf32>
    %cst_88 = arith.constant dense<0xFF800000> : vector<1xf32>
    %280 = vector.multi_reduction <maximumf>, %279, %cst_88 [0] : vector<8x1xf32> to vector<1xf32>
    %281 = vector.shape_cast %280 : vector<1xf32> to vector<1x1xf32>
    %282 = vector.broadcast %281 : vector<1x1xf32> to vector<8x1xf32>
    %283 = arith.subf %279, %282 : vector<8x1xf32>
    %284 = math.exp %283 : vector<8x1xf32>
    %cst_89 = arith.constant dense<0.000000e+00> : vector<1xf32>
    %285 = vector.multi_reduction <add>, %284, %cst_89 [0] : vector<8x1xf32> to vector<1xf32>
    %286 = vector.shape_cast %285 : vector<1xf32> to vector<1x1xf32>
    %287 = tpu.reciprocal %286 {approx = true} : vector<1x1xf32> -> vector<1x1xf32>
    %288 = vector.broadcast %287 : vector<1x1xf32> to vector<8x1xf32>
    %289 = arith.mulf %284, %288 : vector<8x1xf32>
    %290 = vector.broadcast %289 : vector<8x1xf32> to vector<8x32xf32>
    %291 = arith.mulf %290, %265 : vector<8x32xf32>
    %cst_90 = arith.constant dense<0.000000e+00> : vector<32xf32>
    %292 = vector.multi_reduction <add>, %291, %cst_90 [0] : vector<8x32xf32> to vector<32xf32>
    %293 = vector.shape_cast %292 : vector<32xf32> to vector<1x32xf32>
    %c0_91 = arith.constant 0 : index
    %c0_92 = arith.constant 0 : index
    %294 = vector.load %arg10[%c0_91, %c0_92] : memref<32x4xf32, #tpu.memory_space<vmem>>, vector<32x4xf32>
    %cst_93 = arith.constant dense<0.000000e+00> : vector<1x4xf32>
    %295 = tpu.matmul %293, %294, %cst_93 {dimension_numbers = #tpu.dot_dimension_numbers<[1], [0], [0], [1], [0, 0, 1, 1], [], []>} : vector<1x32xf32>, vector<32x4xf32>, vector<1x4xf32> -> vector<1x4xf32>
    %c0_94 = arith.constant 0 : index
    %c0_95 = arith.constant 0 : index
    %296 = vector.load %arg11[%c0_94, %c0_95] : memref<1x4xf32, #tpu.memory_space<vmem>>, vector<1x4xf32>
    %297 = arith.addf %295, %296 : vector<1x4xf32>
    %cst_96 = arith.constant dense<0xFF800000> : vector<1xf32>
    %298 = vector.multi_reduction <maximumf>, %297, %cst_96 [1] : vector<1x4xf32> to vector<1xf32>
    %299 = vector.shape_cast %298 : vector<1xf32> to vector<1x1xf32>
    %300 = vector.broadcast %299 : vector<1x1xf32> to vector<1x4xf32>
    %301 = arith.subf %297, %300 : vector<1x4xf32>
    %302 = vector.broadcast %299 : vector<1x1xf32> to vector<1x4xf32>
    %303 = arith.subf %297, %302 : vector<1x4xf32>
    %304 = math.exp %303 : vector<1x4xf32>
    %cst_97 = arith.constant dense<0.000000e+00> : vector<1xf32>
    %305 = vector.multi_reduction <add>, %304, %cst_97 [1] : vector<1x4xf32> to vector<1xf32>
    %306 = vector.shape_cast %305 : vector<1xf32> to vector<1x1xf32>
    %307 = math.log %306 : vector<1x1xf32>
    %308 = vector.broadcast %307 : vector<1x1xf32> to vector<1x4xf32>
    %309 = arith.subf %301, %308 : vector<1x4xf32>
    %c0_98 = arith.constant 0 : index
    %c0_99 = arith.constant 0 : index
    %310 = vector.load %arg12[%c0_98, %c0_99] : memref<1x4xf32, #tpu.memory_space<vmem>>, vector<1x4xf32>
    tpu.vector_store %arg12[%c0_98, %c0_99], %309 {strides = array<i32>} : memref<1x4xf32, #tpu.memory_space<vmem>>, vector<1x4xf32>,
    return
  }
}

</mosaic_0001>

<bundles_post_ra>
// kernel: lstm_attention_net.1
= control target key start
LH: loop header
LB: loop body
LE: loop exit
PB: predicated region body
PF: predicated region fallthrough
CT: control target
= control target key end

     0   :  { %s1893_s0 = inlined_call_operand.vmem [shape: f32[8,32], index: 0, kind: input, shape index: {}]   ;;  %s1894_s1 = inlined_call_operand.vmem [shape: f32[32,128], index: 1, kind: input, shape index: {}]   ;;  %s1895_s2 = inlined_call_operand.vmem [shape: f32[32,128], index: 2, kind: input, shape index: {}]   ;;  %s1896_s3 = inlined_call_operand.vmem [shape: f32[1,128], index: 3, kind: input, shape index: {}]   ;;  %s1897_s4 = inlined_call_operand.vmem [shape: f32[1,32], index: 4, kind: input, shape index: {}]   ;;  %s1898_s5 = inlined_call_operand.vmem [shape: f32[1,32], index: 5, kind: input, shape index: {}]   ;;  %s1899_s6 = inlined_call_operand.vmem [shape: f32[32,32], index: 6, kind: input, shape index: {}]   ;;  %s1900_s7 = inlined_call_operand.vmem [shape: f32[1,32], index: 7, kind: input, shape index: {}]   ;;  %s1901_s8 = inlined_call_operand.vmem [shape: f32[1,32], index: 8, kind: input, shape index: {}]   ;;  %s1902_s9 = inlined_call_operand.<no memory space> [shape: f32[1,1], index: 9, kind: input, shape index: {}]   ;;  %s1903_s10 = inlined_call_operand.vmem [shape: f32[32,4], index: 10, kind: input, shape index: {}]   ;;  %s1904_s11 = inlined_call_operand.vmem [shape: f32[1,4], index: 11, kind: input, shape index: {}]   ;;  %s1905_s12 = inlined_call_operand.hbm [shape: f32[1,4], index: 12, kind: output, shape index: {}]  }
   0x1   :  { %v17_v0 = vstv %s1902_s9 }
   0x2   :  { %18 = vst [vmem:[#allocation3] sm:$0x1] %v17_v0 }
   0x3   :  { %v53_v1 = vld [vmem:[%s1894_s1 + $0x18] sm:$0xff]  ;;  %v1560_v3 = vmov 0.0   ;;  %v52_v4 = vld [vmem:[%s1894_s1 + $0x10] sm:$0xff]  ;;  %v51_v6 = vld [vmem:[%s1894_s1 + $0x8] sm:$0xff] }
   0x4   :  { %v1640_v2 = vld [vmem:[%s1895_s2 + $0x18] sm:$0xff]  ;;  %1336 = vmatprep.subr.mxu0 %v1560_v3  ;;  %1347 = vmatprep.subr.mxu1 %v1560_v3  ;;  %v1650_v5 = vld [vmem:[%s1895_s2 + $0x10] sm:$0xff]  ;;  %v1661_v7 = vld [vmem:[%s1895_s2 + $0x8] sm:$0xff] }
   0x5   :  { %1337 = vmatpush3.msra.mxu0 %v53_v1  ;;  %1348 = vmatpush3.msra.mxu1 %v1640_v2 }
   0x6   :  { %1338 = vmatprep.subr.mxu0 %v1560_v3  ;;  %1349 = vmatprep.subr.mxu1 %v1560_v3 }
   0x7   :  { %19 = vsyncpa [#allocation5], 0  ;;  %1339 = vmatpush3.msra.mxu0 %v52_v4  ;;  %1350 = vmatpush3.msra.mxu1 %v1650_v5  ;;  %v50_v8 = vld [vmem:[%s1894_s1] sm:$0xff]  ;;  %vm60_vm0 = vcmask 261120   ;;  %vm1561_vm1 = vmmov 0   ;;  %s1563_s25 = smov 32  }
   0x8   :  { %1340 = vmatprep.subr.mxu0 %v1560_v3  ;;  %1351 = vmatprep.subr.mxu1 %v1560_v3  ;;  %v1673_v9 = vld [vmem:[%s1895_s2] sm:$0xff]  ;;  %s1562_s2 = smov 64   ;;  %vm245_vm2 = vcmask 253952   ;;  %vm353_vm3 = vcmask 254977   ;;  %vm575_vm4 = vcmask 257027   ;;  %vm797_vm5 = vcmask 259077  }
   0x9   :  { %1341 = vmatpush3.msra.mxu0 %v51_v6  ;;  %1352 = vmatpush3.msra.mxu1 %v1661_v7  ;;  %v49_v10 = vld [vmem:[%s1893_s0] sm:$0xff]  ;;  %vm464_vm6 = vcmask 256002   ;;  %vm686_vm7 = vcmask 258052   ;;  %vm908_vm8 = vcmask 260102   ;;  %vm1019_vm9 = vcmask 261127  }
   0xa   :  { %1342 = vmatprep.subr.mxu0 %v1560_v3  ;;  %1353 = vmatprep.subr.mxu1 %v1560_v3  ;;  %v134_v11 = vld [vmem:[%s1897_s4] sm:$0x1]  ;;  %vm1126_vm10 = vcmask 7168   ;;  %vm1237_vm11 = vcmask 24576  }
   0xb   :  { %1343 = vmatpush3.msra.mxu0 %v50_v8  ;;  %1344 = vmatprep.mubr.msk.f32.mxu0 %vm1561_vm1, %v1560_v3  ;;  %v1265_v12 = vld [vmem:[%s1896_s3] ss:$0 sm:$0xff] }
   0xc   :  { %1354 = vmatpush3.msra.mxu1 %v1673_v9  ;;  %1355 = vmatprep.mubr.msk.f32.mxu1 %vm1561_vm1, %v1560_v3  ;;  %v1268_v20 = vld [vmem:[%s1898_s5] ss:$0 sm:$0xff] }
   0xd   :  { %1345 = vmatmul.mubr.msk.f32.vlgmr.msra.gmra.mxu0 %vm60_vm0, %v49_v10  ;;  %1356 = vmatmul.mubr.msk.f32.vlgmr.msra.gmra.mxu1 %vm60_vm0, %v134_v11 }
   0xe   :  { %1358 = vmatprep.subr.mxu0 %v1560_v3  ;;  %1366 = vmatprep.mubr.msk.f32.mxu0 %vm1561_vm1, %v1560_v3 }
   0xf   :  { %1359 = vmatpush3.msra.mxu0 %v1640_v2  ;;  %1369 = vmatprep.subr.mxu1 %v1560_v3 }
  0x10   :  { %1360 = vmatprep.subr.mxu0 %v1560_v3  ;;  %1370 = vmatpush3.msra.mxu1 %v1640_v2 }
  0x11   :  { %1361 = vmatpush3.msra.mxu0 %v1650_v5  ;;  %1371 = vmatprep.subr.mxu1 %v1560_v3 }
  0x12   :  { %1362 = vmatprep.subr.mxu0 %v1560_v3  ;;  %1372 = vmatpush3.msra.mxu1 %v1650_v5 }
  0x13   :  { %1363 = vmatpush3.msra.mxu0 %v1661_v7  ;;  %1373 = vmatprep.subr.mxu1 %v1560_v3 }
  0x14   :  { %1364 = vmatprep.subr.mxu0 %v1560_v3  ;;  %1374 = vmatpush3.msra.mxu1 %v1661_v7 }
  0x15   :  { %1365 = vmatpush3.msra.mxu0 %v1673_v9  ;;  %1375 = vmatprep.subr.mxu1 %v1560_v3 }
  0x16   :  { %1376 = vmatpush3.msra.mxu1 %v1673_v9  ;;  %1377 = vmatprep.mubr.msk.f32.mxu1 %vm1561_vm1, %v1560_v3 }
  0x17   :  { %1380 = vmatprep.subr.mxu0 %v1560_v3  ;;  %1391 = vmatprep.subr.mxu1 %v1560_v3 }
  0xcd   :  { %v130_v13 = vpop.f32.mrf.mxu0  ;;  %v205_v14 = vpop.f32.mrf.mxu1 }
  0xce   :  { %v1715_v15 = vadd.f32 %v1265_v12, %v130_v13 }
  0xcf   :  { %v1346_v16 = vpop.f32.mrf.mxu0  ;;  %v1357_v17 = vpop.f32.mrf.mxu1 }
  0xd0   :  { %v209_v18 = vadd.f32 %v205_v14, %v1715_v15 }
  0xd2   :  { %1464 = vtanh.f32 %v209_v18  ;;  %v210_v21 = vsub.f32 0.0, %v209_v18 }
  0xd4   :  { %v211_v22 = vmul.f32 1.442695, %v210_v21 }
  0xd6   :  { %1466 = vpow2.f32 %v211_v22 }
  0xdf   :  { %v1465_v19 = vpop.eup %1464 }
  0xe0   :  { %226 = vrot.lane.b32.xlu0 %v1465_v19, %s1562_s2 }
  0xe3   :  { %v1467_v23 = vpop.eup %1466 }
  0xe4   :  { %221 = vrot.lane.b32.xlu0 %v1268_v20, %s1563_s25  ;;  %v213_v24 = vadd.f32 1.0, %v1467_v23 }
  0xe6   :  { %1468 = vrcp.f32 %v213_v24 }
  0xf3   :  { %v1469_v25 = vpop.eup %1468 }
 0x152   :  { %v227_v26 = vpop.permute.xlu0 %226 }
 0x153   :  { %v229_v27 = vmul.f32 %v1469_v25, %v227_v26 }
 0x155   :  { %231 = vrot.lane.b32.xlu1 %v229_v27, %s1563_s25 }
 0x156   :  { %v222_v28 = vpop.permute.xlu0 %221 }
 0x157   :  { %v224_v29 = vmul.f32 %v1469_v25, %v222_v28 }
 0x1c7   :  { %v232_v30 = vpop.permute.xlu1 %231 }
 0x1c8   :  { %v234_v31 = vadd.f32 %v232_v30, %v224_v29 }
 0x1ca   :  { %1470 = vtanh.f32 %v234_v31  ;;  %v330_v48 = vrot.slane %v234_v31, 7 }
 0x1d7   :  { %v1471_v32 = vpop.eup %1470 }
 0x1d8   :  { %237 = vrot.lane.b32.xlu1 %v1471_v32, %s1562_s2 }
 0x24a   :  { %v238_v33 = vpop.permute.xlu1 %237 }
 0x24b   :  { %v240_v34 = vmul.f32 %v1469_v25, %v238_v33 }
 0x24d   :  { %242 = vrot.lane.b32.xlu0 %v240_v34, %s1563_s25 }
 0x2bf   :  { %v243_v35 = vpop.permute.xlu0 %242 }
 0x2c0   :  { %246 = vst.msk [vmem:[#allocation2] sm:$0x1] %vm245_vm2, %v243_v35  ;;  %1367 = vmatmul.mubr.msk.f32.vlgmr.msra.gmra.mxu0 %vm60_vm0, %v243_v35 }
 0x2c1   :  { %1381 = vmatpush3.msra.mxu0 %v1640_v2  ;;  %1388 = vmatprep.mubr.msk.f32.mxu0 %vm1561_vm1, %v1560_v3 }
 0x2c2   :  { %1382 = vmatprep.subr.mxu0 %v1560_v3 }
 0x2c3   :  { %1383 = vmatpush3.msra.mxu0 %v1650_v5 }
 0x2c4   :  { %1384 = vmatprep.subr.mxu0 %v1560_v3 }
 0x2c5   :  { %1385 = vmatpush3.msra.mxu0 %v1661_v7 }
 0x2c6   :  { %1386 = vmatprep.subr.mxu0 %v1560_v3 }
 0x2c7   :  { %1387 = vmatpush3.msra.mxu0 %v1673_v9 }
 0x2c8   :  { %1402 = vmatprep.subr.mxu0 %v1560_v3 }
 0x380   :  { %v315_v36 = vpop.f32.mrf.mxu0 }
 0x381   :  { %v320_v37 = vrot.slane %v315_v36, 7 }
 0x382   :  { %v1368_v38 = vpop.f32.mrf.mxu0 }
 0x383   :  { %v322_v39 = vadd.f32 %v320_v37, %v1715_v15 }
 0x385   :  { %1472 = vtanh.f32 %v322_v39  ;;  %v323_v41 = vsub.f32 0.0, %v322_v39 }
 0x387   :  { %v324_v42 = vmul.f32 1.442695, %v323_v41 }
 0x389   :  { %1474 = vpow2.f32 %v324_v42 }
 0x392   :  { %v1473_v40 = vpop.eup %1472 }
 0x393   :  { %334 = vrot.lane.b32.xlu1 %v1473_v40, %s1562_s2 }
 0x396   :  { %v1475_v43 = vpop.eup %1474 }
 0x397   :  { %v326_v44 = vadd.f32 1.0, %v1475_v43 }
 0x399   :  { %1476 = vrcp.f32 %v326_v44 }
 0x3a6   :  { %v1477_v45 = vpop.eup %1476 }
 0x3a7   :  { %v332_v49 = vmul.f32 %v1477_v45, %v330_v48 }
 0x405   :  { %v335_v46 = vpop.permute.xlu1 %334 }
 0x406   :  { %v337_v47 = vmul.f32 %v1477_v45, %v335_v46 }
 0x408   :  { %339 = vrot.lane.b32.xlu0 %v337_v47, %s1563_s25 }
 0x47a   :  { %v340_v50 = vpop.permute.xlu0 %339 }
 0x47b   :  { %v342_v51 = vadd.f32 %v340_v50, %v332_v49 }
 0x47d   :  { %1478 = vtanh.f32 %v342_v51  ;;  %v441_v10 = vrot.slane %v342_v51, 7 }
 0x48a   :  { %v1479_v52 = vpop.eup %1478 }
 0x48b   :  { %345 = vrot.lane.b32.xlu1 %v1479_v52, %s1562_s2 }
 0x4fd   :  { %v346_v53 = vpop.permute.xlu1 %345 }
 0x4fe   :  { %v1741_v54 = vmul.f32 %v1477_v45, %v346_v53 }
 0x500   :  { %v355_v55 = vrot.slane %v1741_v54, 1 }
 0x502   :  { %356 = vrot.lane.b32.xlu0 %v355_v55, %s1563_s25 }
 0x574   :  { %v357_v56 = vpop.permute.xlu0 %356 }
 0x575   :  { %1378 = vmatmul.mubr.msk.f32.vlgmr.msra.gmra.mxu1 %vm60_vm0, %v357_v56 }
 0x576   :  { %1392 = vmatpush3.msra.mxu1 %v1640_v2  ;;  %1399 = vmatprep.mubr.msk.f32.mxu1 %vm1561_vm1, %v1560_v3 }
 0x577   :  { %1393 = vmatprep.subr.mxu1 %v1560_v3 }
 0x578   :  { %1394 = vmatpush3.msra.mxu1 %v1650_v5 }
 0x579   :  { %1395 = vmatprep.subr.mxu1 %v1560_v3 }
 0x57a   :  { %1396 = vmatpush3.msra.mxu1 %v1661_v7 }
 0x57b   :  { %1397 = vmatprep.subr.mxu1 %v1560_v3 }
 0x57c   :  { %1398 = vmatpush3.msra.mxu1 %v1673_v9 }
 0x57d   :  { %1413 = vmatprep.subr.mxu1 %v1560_v3 }
 0x635   :  { %v426_v57 = vpop.f32.mrf.mxu1 }
 0x636   :  { %v431_v58 = vrot.slane %v426_v57, 6 }
 0x637   :  { %v1379_v59 = vpop.f32.mrf.mxu1 }
 0x638   :  { %v433_v60 = vadd.f32 %v431_v58, %v1715_v15 }
 0x63a   :  { %1480 = vtanh.f32 %v433_v60  ;;  %v434_v62 = vsub.f32 0.0, %v433_v60 }
 0x63c   :  { %v435_v63 = vmul.f32 1.442695, %v434_v62 }
 0x63e   :  { %1482 = vpow2.f32 %v435_v63 }
 0x647   :  { %v1481_v61 = vpop.eup %1480 }
 0x648   :  { %445 = vrot.lane.b32.xlu1 %v1481_v61, %s1562_s2 }
 0x64b   :  { %v1483_v0 = vpop.eup %1482 }
 0x64c   :  { %v437_v1 = vadd.f32 1.0, %v1483_v0 }
 0x64e   :  { %1484 = vrcp.f32 %v437_v1 }
 0x65b   :  { %v1485_v4 = vpop.eup %1484 }
 0x65c   :  { %v443_v11 = vmul.f32 %v1485_v4, %v441_v10 }
 0x6ba   :  { %v446_v6 = vpop.permute.xlu1 %445 }
 0x6bb   :  { %v448_v8 = vmul.f32 %v1485_v4, %v446_v6 }
 0x6bd   :  { %450 = vrot.lane.b32.xlu0 %v448_v8, %s1563_s25 }
 0x72f   :  { %v451_v12 = vpop.permute.xlu0 %450 }
 0x730   :  { %v453_v13 = vadd.f32 %v451_v12, %v443_v11 }
 0x732   :  { %1486 = vtanh.f32 %v453_v13  ;;  %v552_v32 = vrot.slane %v453_v13, 7 }
 0x73f   :  { %v1487_v14 = vpop.eup %1486 }
 0x740   :  { %456 = vrot.lane.b32.xlu1 %v1487_v14, %s1562_s2 }
 0x7b2   :  { %v457_v16 = vpop.permute.xlu1 %456 }
 0x7b3   :  { %v1760_v17 = vmul.f32 %v1485_v4, %v457_v16 }
 0x7b5   :  { %v466_v18 = vrot.slane %v1760_v17, 2 }
 0x7b7   :  { %467 = vrot.lane.b32.xlu0 %v466_v18, %s1563_s25 }
 0x829   :  { %v468_v19 = vpop.permute.xlu0 %467 }
 0x82a   :  { %1389 = vmatmul.mubr.msk.f32.vlgmr.msra.gmra.mxu0 %vm60_vm0, %v468_v19 }
 0x82b   :  { %1403 = vmatpush3.msra.mxu0 %v1640_v2  ;;  %1410 = vmatprep.mubr.msk.f32.mxu0 %vm1561_vm1, %v1560_v3 }
 0x82c   :  { %1404 = vmatprep.subr.mxu0 %v1560_v3 }
 0x82d   :  { %1405 = vmatpush3.msra.mxu0 %v1650_v5 }
 0x82e   :  { %1406 = vmatprep.subr.mxu0 %v1560_v3 }
 0x82f   :  { %1407 = vmatpush3.msra.mxu0 %v1661_v7 }
 0x830   :  { %1408 = vmatprep.subr.mxu0 %v1560_v3 }
 0x831   :  { %1409 = vmatpush3.msra.mxu0 %v1673_v9 }
 0x832   :  { %1424 = vmatprep.subr.mxu0 %v1560_v3 }
 0x8ea   :  { %v537_v20 = vpop.f32.mrf.mxu0 }
 0x8eb   :  { %v542_v21 = vrot.slane %v537_v20, 5 }
 0x8ec   :  { %v1390_v22 = vpop.f32.mrf.mxu0 }
 0x8ed   :  { %v544_v23 = vadd.f32 %v542_v21, %v1715_v15 }
 0x8ef   :  { %1488 = vtanh.f32 %v544_v23  ;;  %v545_v25 = vsub.f32 0.0, %v544_v23 }
 0x8f1   :  { %v546_v26 = vmul.f32 1.442695, %v545_v25 }
 0x8f3   :  { %1490 = vpow2.f32 %v546_v26 }
 0x8fc   :  { %v1489_v24 = vpop.eup %1488 }
 0x8fd   :  { %556 = vrot.lane.b32.xlu1 %v1489_v24, %s1562_s2 }
 0x900   :  { %v1491_v27 = vpop.eup %1490 }
 0x901   :  { %v548_v28 = vadd.f32 1.0, %v1491_v27 }
 0x903   :  { %1492 = vrcp.f32 %v548_v28 }
 0x910   :  { %v1493_v29 = vpop.eup %1492 }
 0x911   :  { %v554_v33 = vmul.f32 %v1493_v29, %v552_v32 }
 0x96f   :  { %v557_v30 = vpop.permute.xlu1 %556 }
 0x970   :  { %v559_v31 = vmul.f32 %v1493_v29, %v557_v30 }
 0x972   :  { %561 = vrot.lane.b32.xlu0 %v559_v31, %s1563_s25 }
 0x9e4   :  { %v562_v34 = vpop.permute.xlu0 %561 }
 0x9e5   :  { %v564_v35 = vadd.f32 %v562_v34, %v554_v33 }
 0x9e7   :  { %1494 = vtanh.f32 %v564_v35  ;;  %v663_v53 = vrot.slane %v564_v35, 7 }
 0x9f4   :  { %v1495_v36 = vpop.eup %1494 }
 0x9f5   :  { %567 = vrot.lane.b32.xlu1 %v1495_v36, %s1562_s2 }
 0xa67   :  { %v568_v37 = vpop.permute.xlu1 %567 }
 0xa68   :  { %v1779_v38 = vmul.f32 %v1493_v29, %v568_v37 }
 0xa6a   :  { %v577_v39 = vrot.slane %v1779_v38, 3 }
 0xa6c   :  { %578 = vrot.lane.b32.xlu0 %v577_v39, %s1563_s25 }
 0xade   :  { %v579_v40 = vpop.permute.xlu0 %578 }
 0xadf   :  { %1400 = vmatmul.mubr.msk.f32.vlgmr.msra.gmra.mxu1 %vm60_vm0, %v579_v40 }
 0xae0   :  { %1414 = vmatpush3.msra.mxu1 %v1640_v2  ;;  %1421 = vmatprep.mubr.msk.f32.mxu1 %vm1561_vm1, %v1560_v3 }
 0xae1   :  { %1415 = vmatprep.subr.mxu1 %v1560_v3 }
 0xae2   :  { %1416 = vmatpush3.msra.mxu1 %v1650_v5 }
 0xae3   :  { %1417 = vmatprep.subr.mxu1 %v1560_v3 }
 0xae4   :  { %1418 = vmatpush3.msra.mxu1 %v1661_v7 }
 0xae5   :  { %1419 = vmatprep.subr.mxu1 %v1560_v3 }
 0xae6   :  { %1420 = vmatpush3.msra.mxu1 %v1673_v9 }
 0xae7   :  { %1435 = vmatprep.subr.mxu1 %v1560_v3 }
 0xb9f   :  { %v648_v41 = vpop.f32.mrf.mxu1 }
 0xba0   :  { %v653_v42 = vrot.slane %v648_v41, 4 }
 0xba1   :  { %v1401_v43 = vpop.f32.mrf.mxu1 }
 0xba2   :  { %v655_v44 = vadd.f32 %v653_v42, %v1715_v15 }
 0xba4   :  { %1496 = vtanh.f32 %v655_v44  ;;  %v656_v46 = vsub.f32 0.0, %v655_v44 }
 0xba6   :  { %v657_v47 = vmul.f32 1.442695, %v656_v46 }
 0xba8   :  { %1498 = vpow2.f32 %v657_v47 }
 0xbb1   :  { %v1497_v45 = vpop.eup %1496 }
 0xbb2   :  { %667 = vrot.lane.b32.xlu1 %v1497_v45, %s1562_s2 }
 0xbb5   :  { %v1499_v48 = vpop.eup %1498 }
 0xbb6   :  { %v659_v49 = vadd.f32 1.0, %v1499_v48 }
 0xbb8   :  { %1500 = vrcp.f32 %v659_v49 }
 0xbc5   :  { %v1501_v50 = vpop.eup %1500 }
 0xbc6   :  { %v665_v55 = vmul.f32 %v1501_v50, %v663_v53 }
 0xc24   :  { %v668_v51 = vpop.permute.xlu1 %667 }
 0xc25   :  { %v670_v52 = vmul.f32 %v1501_v50, %v668_v51 }
 0xc27   :  { %672 = vrot.lane.b32.xlu0 %v670_v52, %s1563_s25 }
 0xc99   :  { %v673_v56 = vpop.permute.xlu0 %672 }
 0xc9a   :  { %v675_v57 = vadd.f32 %v673_v56, %v665_v55 }
 0xc9c   :  { %1502 = vtanh.f32 %v675_v57  ;;  %v774_v12 = vrot.slane %v675_v57, 7 }
 0xca9   :  { %v1503_v58 = vpop.eup %1502 }
 0xcaa   :  { %678 = vrot.lane.b32.xlu1 %v1503_v58, %s1562_s2 }
 0xd1c   :  { %v679_v59 = vpop.permute.xlu1 %678 }
 0xd1d   :  { %v1798_v60 = vmul.f32 %v1501_v50, %v679_v59 }
 0xd1f   :  { %v688_v61 = vrot.slane %v1798_v60, 4 }
 0xd21   :  { %689 = vrot.lane.b32.xlu0 %v688_v61, %s1563_s25 }
 0xd93   :  { %v690_v62 = vpop.permute.xlu0 %689 }
 0xd94   :  { %1411 = vmatmul.mubr.msk.f32.vlgmr.msra.gmra.mxu0 %vm60_vm0, %v690_v62 }
 0xd95   :  { %1425 = vmatpush3.msra.mxu0 %v1640_v2  ;;  %1432 = vmatprep.mubr.msk.f32.mxu0 %vm1561_vm1, %v1560_v3 }
 0xd96   :  { %1426 = vmatprep.subr.mxu0 %v1560_v3 }
 0xd97   :  { %1427 = vmatpush3.msra.mxu0 %v1650_v5 }
 0xd98   :  { %1428 = vmatprep.subr.mxu0 %v1560_v3 }
 0xd99   :  { %1429 = vmatpush3.msra.mxu0 %v1661_v7 }
 0xd9a   :  { %1430 = vmatprep.subr.mxu0 %v1560_v3 }
 0xd9b   :  { %1431 = vmatpush3.msra.mxu0 %v1673_v9 }
 0xd9c   :  { %1446 = vmatprep.subr.mxu0 %v1560_v3 }
 0xe54   :  { %v759_v63 = vpop.f32.mrf.mxu0 }
 0xe55   :  { %v764_v0 = vrot.slane %v759_v63, 3 }
 0xe56   :  { %v1412_v2 = vpop.f32.mrf.mxu0 }
 0xe57   :  { %v766_v1 = vadd.f32 %v764_v0, %v1715_v15  ;;  %v1024_v2 = vld [vmem:[%s1899_s6 + $0x10] sm:$0xff] }
 0xe59   :  { %1504 = vtanh.f32 %v766_v1  ;;  %v767_v5 = vsub.f32 0.0, %v766_v1 }
 0xe5b   :  { %v768_v6 = vmul.f32 1.442695, %v767_v5 }
 0xe5d   :  { %1506 = vpow2.f32 %v768_v6 }
 0xe66   :  { %v1505_v4 = vpop.eup %1504 }
 0xe67   :  { %778 = vrot.lane.b32.xlu1 %v1505_v4, %s1562_s2 }
 0xe6a   :  { %v1507_v8 = vpop.eup %1506 }
 0xe6b   :  { %v770_v7 = vadd.f32 1.0, %v1507_v8 }
 0xe6d   :  { %1508 = vrcp.f32 %v770_v7 }
 0xe7a   :  { %v1509_v10 = vpop.eup %1508 }
 0xe7b   :  { %v776_v13 = vmul.f32 %v1509_v10, %v774_v12 }
 0xed9   :  { %v779_v11 = vpop.permute.xlu1 %778 }
 0xeda   :  { %v781_v9 = vmul.f32 %v1509_v10, %v779_v11  ;;  %v1276_v11 = vld [vmem:[%s1900_s7] ss:$0 sm:$0xff] }
 0xedc   :  { %783 = vrot.lane.b32.xlu0 %v781_v9, %s1563_s25 }
 0xf4e   :  { %v784_v14 = vpop.permute.xlu0 %783 }
 0xf4f   :  { %v786_v16 = vadd.f32 %v784_v14, %v776_v13  ;;  %v1278_v14 = vld [vmem:[%s1901_s8] ss:$0 sm:$0xff] }
 0xf51   :  { %1510 = vtanh.f32 %v786_v16  ;;  %v885_v35 = vrot.slane %v786_v16, 7 }
 0xf5e   :  { %v1511_v18 = vpop.eup %1510 }
 0xf5f   :  { %789 = vrot.lane.b32.xlu1 %v1511_v18, %s1562_s2 }
 0xfd1   :  { %v790_v19 = vpop.permute.xlu1 %789 }
 0xfd2   :  { %v792_v20 = vmul.f32 %v1509_v10, %v790_v19 }
 0xfd4   :  { %v799_v21 = vrot.slane %v792_v20, 5 }
 0xfd6   :  { %800 = vrot.lane.b32.xlu0 %v799_v21, %s1563_s25  ;;  %v1279_v21 = vld [vmem:[#allocation3] ss:$0 sm:$0xff] }
0x1048   :  { %v801_v22 = vpop.permute.xlu0 %800 }
0x1049   :  { %1422 = vmatmul.mubr.msk.f32.vlgmr.msra.gmra.mxu1 %vm60_vm0, %v801_v22 }
0x104a   :  { %1443 = vmatprep.mubr.msk.f32.mxu1 %vm1561_vm1, %v1560_v3 }
0x1109   :  { %v870_v23 = vpop.f32.mrf.mxu1 }
0x110a   :  { %v875_v24 = vrot.slane %v870_v23, 2 }
0x110b   :  { %v1423_v25 = vpop.f32.mrf.mxu1 }
0x110c   :  { %v877_v26 = vadd.f32 %v875_v24, %v1715_v15 }
0x110e   :  { %1512 = vtanh.f32 %v877_v26  ;;  %v878_v28 = vsub.f32 0.0, %v877_v26 }
0x1110   :  { %v879_v29 = vmul.f32 1.442695, %v878_v28 }
0x1112   :  { %1514 = vpow2.f32 %v879_v29 }
0x111b   :  { %v1513_v27 = vpop.eup %1512 }
0x111c   :  { %889 = vrot.lane.b32.xlu1 %v1513_v27, %s1562_s2 }
0x111f   :  { %v1515_v30 = vpop.eup %1514 }
0x1120   :  { %v881_v31 = vadd.f32 1.0, %v1515_v30 }
0x1122   :  { %1516 = vrcp.f32 %v881_v31 }
0x112f   :  { %v1517_v32 = vpop.eup %1516 }
0x1130   :  { %v887_v36 = vmul.f32 %v1517_v32, %v885_v35 }
0x118e   :  { %v890_v33 = vpop.permute.xlu1 %889 }
0x118f   :  { %v892_v34 = vmul.f32 %v1517_v32, %v890_v33 }
0x1191   :  { %894 = vrot.lane.b32.xlu0 %v892_v34, %s1563_s25 }
0x1203   :  { %v895_v37 = vpop.permute.xlu0 %894 }
0x1204   :  { %v897_v39 = vadd.f32 %v895_v37, %v887_v36 }
0x1206   :  { %1518 = vtanh.f32 %v897_v39 }
0x1213   :  { %v1519_v40 = vpop.eup %1518 }
0x1214   :  { %900 = vrot.lane.b32.xlu1 %v1519_v40, %s1562_s2 }
0x1286   :  { %v901_v41 = vpop.permute.xlu1 %900 }
0x1287   :  { %v903_v42 = vmul.f32 %v1517_v32, %v901_v41 }
0x1289   :  { %v910_v43 = vrot.slane %v903_v42, 6 }
0x128b   :  { %911 = vrot.lane.b32.xlu0 %v910_v43, %s1563_s25 }
0x12fd   :  { %v912_v44 = vpop.permute.xlu0 %911 }
0x12fe   :  { %1433 = vmatmul.mubr.msk.f32.vlgmr.msra.gmra.mxu0 %vm60_vm0, %v912_v44  ;;  %v1162_v44 = vld [vmem:[%s1903_s10 + $0x18] sm:$0xff] }
0x12ff   :  { %1454 = vmatprep.mubr.msk.f32.mxu0 %vm1561_vm1, %v1560_v3  ;;  %1447 = vmatpush3.msra.mxu0 %v1162_v44 }
0x1300   :  { %1448 = vmatprep.subr.mxu0 %v1560_v3 }
0x13be   :  { %v981_v45 = vpop.f32.mrf.mxu0 }
0x13bf   :  { %v986_v46 = vrot.slane %v981_v45, 1  ;;  %v1161_v45 = vld [vmem:[%s1903_s10 + $0x10] sm:$0xff] }
0x13c0   :  { %v1434_v47 = vpop.f32.mrf.mxu0  ;;  %1449 = vmatpush3.msra.mxu0 %v1161_v45 }
0x13c1   :  { %v988_v48 = vadd.f32 %v986_v46, %v1715_v15  ;;  %v996_v15 = vrot.slane %v897_v39, 7  ;;  %1450 = vmatprep.subr.mxu0 %v1560_v3  ;;  %v1160_v46 = vld [vmem:[%s1903_s10 + $0x8] sm:$0xff]  ;;  %v1159_v47 = vld [vmem:[%s1903_s10] sm:$0xff]  ;;  %s1565_s10 = smov [#allocation4]  }
0x13c2   :  { %1451 = vmatpush3.msra.mxu0 %v1160_v46 }
0x13c3   :  { %1520 = vtanh.f32 %v988_v48  ;;  %v989_v50 = vsub.f32 0.0, %v988_v48  ;;  %1452 = vmatprep.subr.mxu0 %v1560_v3 }
0x13c4   :  { %1453 = vmatpush3.msra.mxu0 %v1159_v47 }
0x13c5   :  { %v990_v51 = vmul.f32 1.442695, %v989_v50 }
0x13c7   :  { %1522 = vpow2.f32 %v990_v51 }
0x13d0   :  { %v1521_v49 = vpop.eup %1520 }
0x13d1   :  { %1000 = vrot.lane.b32.xlu1 %v1521_v49, %s1562_s2 }
0x13d4   :  { %v1523_v52 = vpop.eup %1522 }
0x13d5   :  { %v992_v53 = vadd.f32 1.0, %v1523_v52 }
0x13d7   :  { %1524 = vrcp.f32 %v992_v53 }
0x13e4   :  { %v1525_v55 = vpop.eup %1524 }
0x13e5   :  { %v998_v58 = vmul.f32 %v1525_v55, %v996_v15 }
0x1443   :  { %v1001_v56 = vpop.permute.xlu1 %1000 }
0x1444   :  { %v1003_v57 = vmul.f32 %v1525_v55, %v1001_v56 }
0x1446   :  { %1005 = vrot.lane.b32.xlu0 %v1003_v57, %s1563_s25 }
0x144a   :  { %350 = vrot.lane.b32.xlu0 %v1741_v54, %s1563_s25 }
0x144e   :  { %572 = vrot.lane.b32.xlu0 %v1779_v38, %s1563_s25  ;;  %v1025_v38 = vld [vmem:[%s1899_s6 + $0x18] sm:$0xff] }
0x144f   :  { %1436 = vmatpush3.msra.mxu1 %v1025_v38 }
0x1450   :  { %1437 = vmatprep.subr.mxu1 %v1560_v3 }
0x1451   :  { %1438 = vmatpush3.msra.mxu1 %v1024_v2 }
0x1452   :  { %794 = vrot.lane.b32.xlu0 %v792_v20, %s1563_s25  ;;  %1439 = vmatprep.subr.mxu1 %v1560_v3  ;;  %v1564_v20 = vmov 0  }
0x1453   :  { %1463 = vset.pattern.permute.xlu0 %v1564_v20 }
0x14b8   :  { %v1006_v59 = vpop.permute.xlu0 %1005 }
0x14b9   :  { %v1008_v61 = vadd.f32 %v1006_v59, %v998_v58 }
0x14bb   :  { %1526 = vtanh.f32 %v1008_v61 }
0x14bc   :  { %v351_v62 = vpop.permute.xlu0 %350 }
0x14bd   :  { %354 = vst.msk [vmem:[#allocation2] sm:$0x2] %vm353_vm3, %v351_v62 }
0x14c0   :  { %v573_v63 = vpop.permute.xlu0 %572 }
0x14c1   :  { %576 = vst.msk [vmem:[#allocation2] sm:$0x8] %vm575_vm4, %v573_v63 }
0x14c4   :  { %v795_v0 = vpop.permute.xlu0 %794 }
0x14c5   :  { %798 = vst.msk [vmem:[#allocation2] sm:$0x20] %vm797_vm5, %v795_v0 }
0x14c8   :  { %v1527_v54 = vpop.eup %1526 }
0x14c9   :  { %1011 = vrot.lane.b32.xlu1 %v1527_v54, %s1562_s2 }
0x14cd   :  { %461 = vrot.lane.b32.xlu1 %v1760_v17, %s1563_s25  ;;  %v1023_v17 = vld [vmem:[%s1899_s6 + $0x8] sm:$0xff] }
0x14ce   :  { %1440 = vmatpush3.msra.mxu1 %v1023_v17 }
0x14cf   :  { %1441 = vmatprep.subr.mxu1 %v1560_v3  ;;  %v1163_v3 = vld [vmem:[%s1904_s11] sm:$0x1]  ;;  %s1257_s11 = sshll.u32 %s1565_s10, 4  ;;  %s1258_s11 = int_to_ptr.vmem [resolvable:$true] %s1257_s11 }
0x14d0   :  { %s1538_s0 = scalar_lea.vmem %s1258_s11, 16  ;;  %s1542_s1 = scalar_lea.vmem %s1258_s11, 32 }
0x14d1   :  { %683 = vrot.lane.b32.xlu1 %v1798_v60, %s1563_s25  ;;  %v1022_v60 = vld [vmem:[%s1899_s6] sm:$0xff]  ;;  %p1539_p0 = scmp.ne.s32.totalorder %s1258_s11, %s1538_s0  ;;  %p1543_p1 = scmp.lt.s32.totalorder %s1258_s11, %s1258_s11 }
0x14d2   :  { %1442 = vmatpush3.msra.mxu1 %v1022_v60  ;;  %p1544_p2 = scmp.lt.s32.totalorder %s1542_s1, %s1538_s0 }
0x14d4   :  { %p1545_p3 = por %p1544_p2, %p1543_p1 }
0x14d5   :  { %905 = vrot.lane.b32.xlu1 %v903_v42, %s1563_s25 }
0x14d6   :  { %p1546_p4 = pnand %p1545_p3, %p1539_p0 }
0x153b   :  { %v1012_v1 = vpop.permute.xlu1 %1011 }
0x153c   :  { %v1014_v4 = vmul.f32 %v1525_v55, %v1012_v1 }
0x153e   :  { %1016 = vrot.lane.b32.xlu0 %v1014_v4, %s1563_s25 }
0x153f   :  { %v462_v5 = vpop.permute.xlu1 %461 }
0x1540   :  { %465 = vst.msk [vmem:[#allocation2] sm:$0x4] %vm464_vm6, %v462_v5 }
0x1543   :  { %v684_v6 = vpop.permute.xlu1 %683 }
0x1544   :  { %687 = vst.msk [vmem:[#allocation2] sm:$0x10] %vm686_vm7, %v684_v6 }
0x1547   :  { %v906_v8 = vpop.permute.xlu1 %905 }
0x1548   :  { %909 = vst.msk [vmem:[#allocation2] sm:$0x40] %vm908_vm8, %v906_v8 }
0x15b0   :  { %v1017_v7 = vpop.permute.xlu0 %1016 }
0x15b1   :  { %1020 = vst.msk [vmem:[#allocation2] sm:$0x80] %vm1019_vm9, %v1017_v7 }
0x15b8   :  { %v1021_v10 = vld [vmem:[#allocation2] sm:$0xff] }
0x15b9   :  { %1444 = vmatmul.mubr.msk.f32.vlgmr.msra.gmra.mxu1 %vm60_vm0, %v1021_v10 }
0x1679   :  { %v1102_v9 = vpop.f32.mrf.mxu1 }
0x167a   :  { %v1103_v12 = vadd.f32 %v1276_v11, %v1102_v9 }
0x167b   :  { %v1445_v13 = vpop.f32.mrf.mxu1 }
0x167c   :  { %1528 = vtanh.f32 %v1103_v12 }
0x1689   :  { %v1529_v16 = vpop.eup %1528 }
0x168a   :  { %v1114_v18 = vmul.f32 %v1529_v16, %v1278_v14 }
0x168c   :  { %v1115_v19 = vsel %vm60_vm0, %v1114_v18, 0.0 }
0x168d   :  { %1116 = vadd.xlane.f32.xlu1 %v1115_v19 }
0x1716   :  { %v1117_v22 = vpop.xlane.xlu1 %1116 }
0x1717   :  { %v1125_v23 = vadd.f32 %v1279_v21, %v1117_v22 }
0x1719   :  { %v1127_v24 = vsel %vm1126_vm10, %v1125_v23, -inf }
0x171a   :  { %v1128_v25 = vrot.slane %v1127_v24, 4 }
0x171c   :  { %v1129_v26 = vmax.f32 %v1127_v24, %v1128_v25 }
0x171e   :  { %v1130_v27 = vrot.slane %v1129_v26, 2 }
0x1720   :  { %v1131_v28 = vmax.f32 %v1129_v26, %v1130_v27 }
0x1722   :  { %v1132_v29 = vrot.slane %v1131_v28, 1 }
0x1724   :  { %v1133_v30 = vmax.f32 %v1131_v28, %v1132_v29 }
0x1726   :  { %v1134_v31 = vsub.f32 %v1125_v23, %v1133_v30 }
0x1728   :  { %v1135_v32 = vmul.f32 1.442695, %v1134_v31 }
0x172a   :  { %1530 = vpow2.f32 %v1135_v32 }
0x1737   :  { %v1531_v33 = vpop.eup %1530 }
0x1738   :  { %v1137_v34 = vsel %vm1126_vm10, %v1531_v33, 0.0 }
0x1739   :  { %v1138_v35 = vrot.slane %v1137_v34, 4 }
0x173b   :  { %v1139_v36 = vadd.f32 %v1138_v35, %v1137_v34 }
0x173d   :  { %v1140_v37 = vrot.slane %v1139_v36, 2 }
0x173f   :  { %v1141_v39 = vadd.f32 %v1140_v37, %v1139_v36 }
0x1741   :  { %v1142_v40 = vrot.slane %v1141_v39, 1 }
0x1743   :  { %v1143_v41 = vadd.f32 %v1142_v40, %v1141_v39 }
0x1745   :  { %1532 = vrcp.f32 %v1143_v41 }
0x1752   :  { %v1533_v42 = vpop.eup %1532 }
0x1753   :  { %v1145_v43 = vmul.f32 %v1533_v42, %v1531_v33 }
0x1755   :  { %1148 = vperm.xlu0 %1463, %v1145_v43  }
0x17d0   :  { %v1149_v48 = vpop.permute.xlu0 %1148 }
0x17d1   :  { %v1151_v49 = vmul.f32 %v1149_v48, %v1021_v10 }
0x17d3   :  { %v1152_v50 = vsel %vm60_vm0, %v1151_v49, 0.0 }
0x17d4   :  { %v1153_v51 = vrot.slane %v1152_v50, 4 }
0x17d6   :  { %v1154_v52 = vadd.f32 %v1153_v51, %v1152_v50 }
0x17d8   :  { %v1155_v53 = vrot.slane %v1154_v52, 2 }
0x17da   :  { %v1156_v55 = vadd.f32 %v1155_v53, %v1154_v52 }
0x17dc   :  { %v1157_v56 = vrot.slane %v1156_v55, 1 }
0x17de   :  { %v1158_v57 = vadd.f32 %v1157_v56, %v1156_v55 }
0x17e0   :  { %1455 = vmatmul.mubr.msk.f32.vlgmr.msra.gmra.mxu0 %vm60_vm0, %v1158_v57 }
0x18a0   :  { %v1233_v15 = vpop.f32.mrf.mxu0 }
0x18a1   :  { %v1234_v58 = vadd.f32 %v1233_v15, %v1163_v3 }
0x18a2   :  { %v1456_v59 = vpop.f32.mrf.mxu0 }
0x18a3   :  { %v1238_v61 = vsel %vm1237_vm11, %v1234_v58, -inf }
0x18a4   :  { %1239 = vmax.xlane.f32.xlu0 %v1238_v61 }
0x192d   :  { %v1240_v62 = vpop.xlane.xlu0 %1239 }
0x192e   :  { %v1241_v63 = vsub.f32 %v1234_v58, %v1240_v62 }
0x1930   :  { %v1242_v0 = vmul.f32 1.442695, %v1241_v63 }
0x1932   :  { %1534 = vpow2.f32 %v1242_v0 }
0x193f   :  { %v1535_v54 = vpop.eup %1534 }
0x1940   :  { %v1244_v38 = vsel %vm1237_vm11, %v1535_v54, 0.0 }
0x1941   :  { %1245 = vadd.xlane.f32.xlu1 %v1244_v38 }
0x19ca   :  { %v1246_v2 = vpop.xlane.xlu1 %1245 }
0x19cb   :  { %1536 = vlog2.f32 %v1246_v2 }
0x19d8   :  { %v1537_v17 = vpop.eup %1536 }
0x19d9   :  { %v1248_v60 = vmul.f32 0.6931472, %v1537_v17 }
0x19db   :  { %v1249_v1 = vsub.f32 %v1241_v63, %v1248_v60 }
0x19dd   :  { %1250 = vst.msk [vmem:[#allocation4] sm:$0x1] %vm1237_vm11, %v1249_v1 }
0x19de   :  { %1549 = shalt.err (!%p1546_p4)
}
0x19df   :  { %1260 = dma.vmem_to_hbm [thread:$0]  %s1258_s11, 16, %s1905_s12, [#allocation5]  }
0x19e0   :  { %1558 = dma.done.wait [#allocation5], 16  }
0x19e1   :  { %1559 = vsyncadd [#allocation5], 4294967280 }
0x19e2   :  { %1264 = vsyncpa [#allocation5], 1 }

</bundles_post_ra>
